<compile_context>
chip_gen: v7x
topology: tpu7x:2x2x1
jax: 0.10.0
libtpu: 0.0.40
codegen_flags: <defaults>
</compile_context>

<pallas_src>
import functools

import jax
import jax.numpy as jnp
import numpy as np
from jax import lax
from jax.experimental import pallas as pl
from jax.experimental.pallas import tpu as pltpu

IN_DIM = 4
HIDDEN = 128
OUT_DIM = 2
DROP_P = 0.6
_KEEP_SCALE = 1.0 / (1.0 - DROP_P)
# keep iff 24-bit hash value >= thresh  ->  P(keep) = 1 - p
_DROP_THRESH24 = np.int32(int(DROP_P * (1 << 24)))


def _dropout_keep_mask(seed_i32, col0_i32, shape):
    """Counter-based keep mask.  Pure int32 VPU ops; portable (TPU + interpret)."""
    rows = lax.broadcasted_iota(jnp.int32, shape, 0)
    cols = lax.broadcasted_iota(jnp.int32, shape, 1) + col0_i32  # global batch col
    x = seed_i32 * jnp.int32(0x61C88647) + rows * jnp.int32(0x01000193) + cols
    # integer mixer (avalanche); wrapping int32 arithmetic is well-defined in XLA
    x = (x ^ lax.shift_right_logical(x, 15)) * jnp.int32(0x2C1B3C6D)
    x = (x ^ lax.shift_right_logical(x, 12)) * jnp.int32(0x297A2D39)
    x = x ^ lax.shift_right_logical(x, 15)
    r = lax.shift_right_logical(x, 8)          # uniform in [0, 2^24), sign-safe
    return r >= _DROP_THRESH24


def _policy_kernel(seed_ref, xT_ref, w1T_ref, b1T_ref, w2T_ref, b2T_ref, oT_ref,
                   *, training):
    """Fused forward in transposed (feature-major, batch-on-lanes) layout."""
    xT = xT_ref[...]          # (4, TB)
    w1T = w1T_ref[...]        # (128, 4)   (pre-scaled by 1/(1-p) when training)

    # affine1 as 4 broadcast FMAs on the VPU (outer-product accumulation).
    #   h[f, b] = b1[f] + sum_k W1T[f, k] * xT[k, b]
    h = b1T_ref[...]          # (128, 1), broadcasts over lanes
    for k in range(IN_DIM):   # static unroll (IN_DIM == 4)
        h = h + w1T[:, k:k + 1] * xT[k:k + 1, :]        # -> (128, TB)

    if training:
        # Inverted dropout; the 1/(1-p) scale is already folded into w1/b1.
        tb = h.shape[1]
        col0 = pl.program_id(0) * tb                    # global column offset
        keep = _dropout_keep_mask(seed_ref[0], col0, h.shape)
        h = jnp.where(keep, h, 0.0)
    # eval mode: dropout is identity (nn.Dropout eval semantics)

    h = jnp.maximum(h, 0.0)   # ReLU

    # affine2 on the MXU: (2, 128) @ (128, TB) -> (2, TB).
    s = jnp.dot(w2T_ref[...], h, preferred_element_type=jnp.float32) + b2T_ref[...]

    # 2-way softmax over the action axis (axis 0):
    #   p0 = 1 / (1 + exp(s1 - s0)), p1 = 1 - p0, computed in the stable form.
    d = s[1:2, :] - s[0:1, :]                            # (1, TB)
    e = jnp.exp(-jnp.abs(d))                             # in (0, 1], no overflow
    den = 1.0 + e
    inv = pl.reciprocal(den, approx=True)                # EUP slot
    inv = inv * (2.0 - den * inv)                        # 1 Newton step -> ~exact
    p_hi = inv                                           # prob of larger logit
    p_lo = e * inv
    p0 = jnp.where(d > 0, p_lo, p_hi)
    p1 = 1.0 - p0
    oT_ref[...] = jnp.concatenate([p0, p1], axis=0).astype(oT_ref.dtype)


def _round_up(n, m):
    return ((n + m - 1) // m) * m


@functools.partial(jax.jit, static_argnames=("training", "block_b"))
def policy_forward(x, w1, b1, w2, b2, seed=0, *, training=False, block_b=2048):
    """x: (B, 4) f32 -> (B, 2) softmax probabilities.

    Weights are in x @ W + b layout: w1 (4,128), b1 (1,128), w2 (128,2), b2 (1,2).
    """
    B = x.shape[0]
    assert block_b % 128 == 0

    # Batch tile (lane axis).  When B > 128, aim for >= 2 grid steps so the
    # "parallel" batch axis can shard across v7x's two TensorCores.
    if B > 128:
        tb_target = _round_up((B + 1) // 2, 128)
    else:
        tb_target = 128
    TB = min(block_b, tb_target)
    Bp = _round_up(B, TB)
    nb = Bp // TB

    # Fold the inverted-dropout scale into the first layer (O(weights), not O(B)).
    if training:
        w1 = w1 * _KEEP_SCALE
        b1 = b1 * _KEEP_SCALE

    # Wrapper-side layout plumbing: lane-dense, batch-last.  Padded columns
    # B..Bp flow through dropout/softmax as wasted work and are sliced off.
    xT = jnp.pad(x.T, ((0, 0), (0, Bp - B)))   # (4, Bp)
    w1T = w1.T                                 # (128, 4)
    b1T = b1.reshape(HIDDEN, 1)                # (128, 1)
    w2T = w2.T                                 # (2, 128)
    b2T = b2.reshape(OUT_DIM, 1)               # (2, 1)
    seed_arr = jnp.asarray(seed, jnp.int32).reshape((1,))

    kernel = functools.partial(_policy_kernel, training=training)
    resident = lambda i, seed_ref: (0, 0)      # weights/biases stay VMEM-resident

    outT = pl.pallas_call(
        kernel,
        out_shape=jax.ShapeDtypeStruct((OUT_DIM, Bp), jnp.float32),
        grid_spec=pltpu.PrefetchScalarGridSpec(
            num_scalar_prefetch=1,
            grid=(nb,),
            in_specs=[
                pl.BlockSpec((IN_DIM, TB), lambda i, seed_ref: (0, i)),
                pl.BlockSpec((HIDDEN, IN_DIM), resident),
                pl.BlockSpec((HIDDEN, 1), resident),
                pl.BlockSpec((OUT_DIM, HIDDEN), resident),
                pl.BlockSpec((OUT_DIM, 1), resident),
            ],
            out_specs=pl.BlockSpec((OUT_DIM, TB), lambda i, seed_ref: (0, i)),
        ),
        compiler_params=pltpu.CompilerParams(
            dimension_semantics=("parallel",),   # batch axis: megacore-shardable
        ),
    )(seed_arr, xT, w1T, b1T, w2T, b2T)

    return outT[:, :B].T   # back to (B, 2)


def init_params(key):
    """Deterministic init mirroring torch.nn.Linear's U(-1/sqrt(fan_in), +1/sqrt(fan_in))."""
    k1, k2, k3, k4 = jax.random.split(key, 4)
    bound1 = 1.0 / np.sqrt(IN_DIM)
    bound2 = 1.0 / np.sqrt(HIDDEN)
    w1 = jax.random.uniform(k1, (IN_DIM, HIDDEN), jnp.float32, -bound1, bound1)
    b1 = jax.random.uniform(k2, (1, HIDDEN), jnp.float32, -bound1, bound1)
    w2 = jax.random.uniform(k3, (HIDDEN, OUT_DIM), jnp.float32, -bound2, bound2)
    b2 = jax.random.uniform(k4, (1, OUT_DIM), jnp.float32, -bound2, bound2)
    return w1, b1, w2, b2


def policy_forward_ref(x, w1, b1, w2, b2):
    """Pure-JAX reference (eval mode: dropout is identity)."""
    h = jnp.maximum(x @ w1 + b1, 0.0)
    s = h @ w2 + b2
    return jax.nn.softmax(s, axis=1)


if __name__ == "__main__":
    key = jax.random.PRNGKey(0)
    pkey, xkey = jax.random.split(key)
    w1, b1, w2, b2 = init_params(pkey)

    B = 8  # CartPole observation dim = 4
    x = jax.random.normal(xkey, (B, IN_DIM), jnp.float32)

    # Eval mode: deterministic (dropout is identity) -> must match the JAX ref.
    out = policy_forward(x, w1, b1, w2, b2, training=False)
    out = jax.block_until_ready(out)
    ref = policy_forward_ref(x, w1, b1, w2, b2)
    np.testing.assert_allclose(np.asarray(out), np.asarray(ref), rtol=1e-5, atol=1e-5)
    np.testing.assert_allclose(np.asarray(out).sum(axis=1), np.ones(B), rtol=1e-5, atol=1e-5)

    # Training mode: exercises the hash-seeded dropout path.  Softmax rows
    # still sum to 1, and different seeds must give different dropout masks.
    out_a = jax.block_until_ready(policy_forward(x, w1, b1, w2, b2, seed=1, training=True))
    out_b = jax.block_until_ready(policy_forward(x, w1, b1, w2, b2, seed=2, training=True))
    assert out_a.shape == (B, OUT_DIM)
    np.testing.assert_allclose(np.asarray(out_a).sum(axis=1), np.ones(B), rtol=1e-5, atol=1e-5)
    assert not np.allclose(np.asarray(out_a), np.asarray(out_b)), \
        "dropout masks should differ across seeds"

    print("KERNEL_OK")
</pallas_src>

<mosaic_0001>
module attributes {stable_mosaic.version = 11 : i64} {
  func.func @_policy_kernel(%arg0: i32, %arg1: memref<1xi32, #tpu.memory_space<smem>>, %arg2: memref<4x128xf32, #tpu.memory_space<vmem>>, %arg3: memref<128x4xf32, #tpu.memory_space<vmem>>, %arg4: memref<128x1xf32, #tpu.memory_space<vmem>>, %arg5: memref<2x128xf32, #tpu.memory_space<vmem>>, %arg6: memref<2x1xf32, #tpu.memory_space<vmem>>, %arg7: memref<2x128xf32, #tpu.memory_space<vmem>>) attributes {dimension_semantics = [#tpu.dimension_semantics<parallel>], iteration_bounds = array<i64: 1>, scalar_prefetch = 1 : i64, scratch_operands = 0 : i64, tpu.core_type = #tpu.core_type<tc>, window_params = [{transform_indices = @transform_0, window_bounds = array<i64: 4, 128>}, {pipeline_mode = #tpu.pipeline_mode<synchronous>, transform_indices = @transform_1, window_bounds = array<i64: 128, 4>}, {pipeline_mode = #tpu.pipeline_mode<synchronous>, transform_indices = @transform_2, window_bounds = array<i64: 128, 1>}, {pipeline_mode = #tpu.pipeline_mode<synchronous>, transform_indices = @transform_3, window_bounds = array<i64: 2, 128>}, {pipeline_mode = #tpu.pipeline_mode<synchronous>, transform_indices = @transform_4, window_bounds = array<i64: 2, 1>}, {transform_indices = @transform_5, window_bounds = array<i64: 2, 128>}]} {
    %c0 = arith.constant 0 : index
    %c0_0 = arith.constant 0 : index
    %0 = vector.load %arg2[%c0, %c0_0] : memref<4x128xf32, #tpu.memory_space<vmem>>, vector<4x128xf32>
    %c0_1 = arith.constant 0 : index
    %c0_2 = arith.constant 0 : index
    %1 = vector.load %arg3[%c0_1, %c0_2] : memref<128x4xf32, #tpu.memory_space<vmem>>, vector<128x4xf32>
    %c0_3 = arith.constant 0 : index
    %c0_4 = arith.constant 0 : index
    %2 = vector.load %arg4[%c0_3, %c0_4] : memref<128x1xf32, #tpu.memory_space<vmem>>, vector<128x1xf32>
    %3 = vector.extract_strided_slice %1 {offsets = [0, 0], sizes = [128, 1], strides = [1, 1]} : vector<128x4xf32> to vector<128x1xf32>
    %4 = vector.extract_strided_slice %0 {offsets = [0, 0], sizes = [1, 128], strides = [1, 1]} : vector<4x128xf32> to vector<1x128xf32>
    %5 = vector.broadcast %3 : vector<128x1xf32> to vector<128x128xf32>
    %6 = vector.broadcast %4 : vector<1x128xf32> to vector<128x128xf32>
    %7 = arith.mulf %5, %6 : vector<128x128xf32>
    %8 = vector.broadcast %2 : vector<128x1xf32> to vector<128x128xf32>
    %9 = arith.addf %8, %7 : vector<128x128xf32>
    %10 = vector.extract_strided_slice %1 {offsets = [0, 1], sizes = [128, 1], strides = [1, 1]} : vector<128x4xf32> to vector<128x1xf32>
    %11 = vector.extract_strided_slice %0 {offsets = [1, 0], sizes = [1, 128], strides = [1, 1]} : vector<4x128xf32> to vector<1x128xf32>
    %12 = vector.broadcast %10 : vector<128x1xf32> to vector<128x128xf32>
    %13 = vector.broadcast %11 : vector<1x128xf32> to vector<128x128xf32>
    %14 = arith.mulf %12, %13 : vector<128x128xf32>
    %15 = arith.addf %9, %14 : vector<128x128xf32>
    %16 = vector.extract_strided_slice %1 {offsets = [0, 2], sizes = [128, 1], strides = [1, 1]} : vector<128x4xf32> to vector<128x1xf32>
    %17 = vector.extract_strided_slice %0 {offsets = [2, 0], sizes = [1, 128], strides = [1, 1]} : vector<4x128xf32> to vector<1x128xf32>
    %18 = vector.broadcast %16 : vector<128x1xf32> to vector<128x128xf32>
    %19 = vector.broadcast %17 : vector<1x128xf32> to vector<128x128xf32>
    %20 = arith.mulf %18, %19 : vector<128x128xf32>
    %21 = arith.addf %15, %20 : vector<128x128xf32>
    %22 = vector.extract_strided_slice %1 {offsets = [0, 3], sizes = [128, 1], strides = [1, 1]} : vector<128x4xf32> to vector<128x1xf32>
    %23 = vector.extract_strided_slice %0 {offsets = [3, 0], sizes = [1, 128], strides = [1, 1]} : vector<4x128xf32> to vector<1x128xf32>
    %24 = vector.broadcast %22 : vector<128x1xf32> to vector<128x128xf32>
    %25 = vector.broadcast %23 : vector<1x128xf32> to vector<128x128xf32>
    %26 = arith.mulf %24, %25 : vector<128x128xf32>
    %27 = arith.addf %21, %26 : vector<128x128xf32>
    %cst = arith.constant 0.000000e+00 : f32
    %28 = vector.broadcast %cst : f32 to vector<128x128xf32>
    %29 = arith.maximumf %27, %28 : vector<128x128xf32>
    %c0_5 = arith.constant 0 : index
    %c0_6 = arith.constant 0 : index
    %30 = vector.load %arg5[%c0_5, %c0_6] : memref<2x128xf32, #tpu.memory_space<vmem>>, vector<2x128xf32>
    %cst_7 = arith.constant dense<0.000000e+00> : vector<2x128xf32>
    %31 = tpu.matmul %30, %29, %cst_7 {dimension_numbers = #tpu.dot_dimension_numbers<[1], [0], [0], [1], [0, 0, 1, 1], [], []>} : vector<2x128xf32>, vector<128x128xf32>, vector<2x128xf32> -> vector<2x128xf32>
    %c0_8 = arith.constant 0 : index
    %c0_9 = arith.constant 0 : index
    %32 = vector.load %arg6[%c0_8, %c0_9] : memref<2x1xf32, #tpu.memory_space<vmem>>, vector<2x1xf32>
    %33 = vector.broadcast %32 : vector<2x1xf32> to vector<2x128xf32>
    %34 = arith.addf %31, %33 : vector<2x128xf32>
    %35 = vector.extract_strided_slice %34 {offsets = [1, 0], sizes = [1, 128], strides = [1, 1]} : vector<2x128xf32> to vector<1x128xf32>
    %36 = vector.extract_strided_slice %34 {offsets = [0, 0], sizes = [1, 128], strides = [1, 1]} : vector<2x128xf32> to vector<1x128xf32>
    %37 = arith.subf %35, %36 : vector<1x128xf32>
    %38 = math.absf %37 : vector<1x128xf32>
    %cst_10 = arith.constant 0.000000e+00 : f32
    %39 = vector.broadcast %cst_10 : f32 to vector<1x128xf32>
    %40 = arith.subf %39, %38 : vector<1x128xf32>
    %41 = math.exp %40 : vector<1x128xf32>
    %cst_11 = arith.constant 1.000000e+00 : f32
    %42 = vector.broadcast %cst_11 : f32 to vector<1x128xf32>
    %43 = arith.addf %42, %41 : vector<1x128xf32>
    %44 = tpu.reciprocal %43 {approx = true} : vector<1x128xf32> -> vector<1x128xf32>
    %45 = arith.mulf %43, %44 : vector<1x128xf32>
    %cst_12 = arith.constant 2.000000e+00 : f32
    %46 = vector.broadcast %cst_12 : f32 to vector<1x128xf32>
    %47 = arith.subf %46, %45 : vector<1x128xf32>
    %48 = arith.mulf %44, %47 : vector<1x128xf32>
    %49 = arith.mulf %41, %48 : vector<1x128xf32>
    %cst_13 = arith.constant 0.000000e+00 : f32
    %50 = vector.broadcast %cst_13 : f32 to vector<1x128xf32>
    %51 = arith.cmpf ogt, %37, %50 : vector<1x128xf32>
    %52 = arith.select %51, %49, %48 : vector<1x128xi1>, vector<1x128xf32>
    %cst_14 = arith.constant 1.000000e+00 : f32
    %53 = vector.broadcast %cst_14 : f32 to vector<1x128xf32>
    %54 = arith.subf %53, %52 : vector<1x128xf32>
    %55 = tpu.concatenate %52, %54 in 0 : vector<1x128xf32>, vector<1x128xf32> -> vector<2x128xf32>
    %c0_15 = arith.constant 0 : index
    %c0_16 = arith.constant 0 : index
    %56 = vector.load %arg7[%c0_15, %c0_16] : memref<2x128xf32, #tpu.memory_space<vmem>>, vector<2x128xf32>
    tpu.vector_store %arg7[%c0_15, %c0_16], %55 {strides = array<i32>} : memref<2x128xf32, #tpu.memory_space<vmem>>, vector<2x128xf32>,
    return
  }
  func.func @transform_0(%arg0: i32, %arg1: memref<1xi32, #tpu.memory_space<smem>>) -> (i32, i32) {
    %c0_i32 = arith.constant 0 : i32
    %c0_i32_0 = arith.constant 0 : i32
    return %c0_i32, %arg0 : i32, i32
  }
  func.func @transform_1(%arg0: i32, %arg1: memref<1xi32, #tpu.memory_space<smem>>) -> (i32, i32) {
    %c0_i32 = arith.constant 0 : i32
    %c0_i32_0 = arith.constant 0 : i32
    %c0_i32_1 = arith.constant 0 : i32
    return %c0_i32, %c0_i32_0 : i32, i32
  }
  func.func @transform_2(%arg0: i32, %arg1: memref<1xi32, #tpu.memory_space<smem>>) -> (i32, i32) {
    %c0_i32 = arith.constant 0 : i32
    %c0_i32_0 = arith.constant 0 : i32
    %c0_i32_1 = arith.constant 0 : i32
    return %c0_i32, %c0_i32_0 : i32, i32
  }
  func.func @transform_3(%arg0: i32, %arg1: memref<1xi32, #tpu.memory_space<smem>>) -> (i32, i32) {
    %c0_i32 = arith.constant 0 : i32
    %c0_i32_0 = arith.constant 0 : i32
    %c0_i32_1 = arith.constant 0 : i32
    return %c0_i32, %c0_i32_0 : i32, i32
  }
  func.func @transform_4(%arg0: i32, %arg1: memref<1xi32, #tpu.memory_space<smem>>) -> (i32, i32) {
    %c0_i32 = arith.constant 0 : i32
    %c0_i32_0 = arith.constant 0 : i32
    %c0_i32_1 = arith.constant 0 : i32
    return %c0_i32, %c0_i32_0 : i32, i32
  }
  func.func @transform_5(%arg0: i32, %arg1: memref<1xi32, #tpu.memory_space<smem>>) -> (i32, i32) {
    %c0_i32 = arith.constant 0 : i32
    %c0_i32_0 = arith.constant 0 : i32
    return %c0_i32, %arg0 : i32, i32
  }
}

</mosaic_0001>

<bundles_post_ra>
// kernel: policy_forward.1
= control target key start
LH: loop header
LB: loop body
LE: loop exit
PB: predicated region body
PF: predicated region fallthrough
CT: control target
= control target key end

     0   :  { %v802_v0 = vmov 2   ;;  %v803_v1 = vmov 0   ;;  %v804_v8 = vmov 1   ;;  %v805_v16 = vmov 3   ;;  %s1235_s3 = inlined_call_operand.vmem [shape: f32[128,1], index: 3, kind: input, shape index: {}]   ;;  %s1236_s2 = inlined_call_operand.vmem [shape: f32[128,4], index: 2, kind: input, shape index: {}]   ;;  %s1237_s0 = inlined_call_operand.<no memory space> [shape: s32[1], index: 0, kind: input, shape index: {}]   ;;  %s1238_s1 = inlined_call_operand.vmem [shape: f32[4,128], index: 1, kind: input, shape index: {}]   ;;  %s1239_s5 = inlined_call_operand.vmem [shape: f32[2,1], index: 5, kind: input, shape index: {}]   ;;  %s1240_s4 = inlined_call_operand.vmem [shape: f32[2,128], index: 4, kind: input, shape index: {}]   ;;  %s1241_s6 = inlined_call_operand.vmem [shape: f32[2,128], index: 6, kind: output, shape index: {}]  }
   0x1   :  { %762 = vset.pattern.permute.xlu0 %v802_v0  ;;  %754 = vset.pattern.permute.xlu1 %v803_v1  ;;  %v39_v2 = vld [vmem:[%s1235_s3] sm:$0xff]  ;;  %v852_v3 = vld [vmem:[%s1236_s2 + $0x10] sm:$0xff]  ;;  %v40_v4 = vld [vmem:[%s1235_s3 + $0x8] sm:$0xff]  ;;  %v806_v28 = vmov 0.0|0.0   ;;  %vm807_vm0 = vmmov 0   ;;  %vm664_vm2 = vcmask 1040384  }
   0x2   :  { %157 = vperm.xlu1 %754, %v39_v2   ;;  %360 = vperm.xlu0 %762, %v852_v3   ;;  %v861_v5 = vld [vmem:[%s1236_s2 + $0x30] sm:$0xff]  ;;  %v872_v7 = vld [vmem:[%s1236_s2 + $0x8] sm:$0xff]  ;;  %v23_v9 = vld [vmem:[%s1236_s2] sm:$0xff]  ;;  %v135_v2 = vlaneseq }
   0x3   :  { %v867_v6 = vld [vmem:[%s1236_s2 + $0x50] sm:$0xff]  ;;  %v26_v10 = vld [vmem:[%s1236_s2 + $0x18] sm:$0xff]  ;;  %v44_v13 = vld [vmem:[%s1235_s3 + $0x28] sm:$0xff]  ;;  %723 = vmatprep.subr.bf16.mxu0 %v806_v28 }
   0x4   :  { %v41_v11 = vld [vmem:[%s1235_s3 + $0x10] sm:$0xff]  ;;  %v42_v12 = vld [vmem:[%s1235_s3 + $0x18] sm:$0xff]  ;;  %v48_v17 = vld [vmem:[%s1235_s3 + $0x48] sm:$0xff] }
   0x5   :  { %v902_v14 = vld [vmem:[%s1236_s2 + $0x38] sm:$0xff]  ;;  %v45_v15 = vld [vmem:[%s1235_s3 + $0x30] sm:$0xff]  ;;  %v27_v18 = vld [vmem:[%s1236_s2 + $0x20] sm:$0xff] }
   0x6   :  { %162 = vperm.xlu1 %754, %v40_v4   ;;  %376 = vperm.xlu0 %762, %v861_v5   ;;  %v920_v19 = vld [vmem:[%s1236_s2 + $0x58] sm:$0xff]  ;;  %v28_v20 = vld [vmem:[%s1236_s2 + $0x28] sm:$0xff]  ;;  %v49_v21 = vld [vmem:[%s1235_s3 + $0x50] sm:$0xff] }
   0x7   :  { %v52_v22 = vld [vmem:[%s1235_s3 + $0x68] sm:$0xff]  ;;  %v936_v23 = vld [vmem:[%s1236_s2 + $0x78] sm:$0xff]  ;;  %v43_v24 = vld [vmem:[%s1235_s3 + $0x20] sm:$0xff] }
   0x8   :  { %v53_v25 = vld [vmem:[%s1235_s3 + $0x70] sm:$0xff]  ;;  %v46_v27 = vld [vmem:[%s1235_s3 + $0x38] sm:$0xff]  ;;  %v31_v29 = vld [vmem:[%s1236_s2 + $0x40] sm:$0xff] }
   0x9   :  { %v957_v26 = vld [vmem:[%s1236_s2 + $0x70] sm:$0xff]  ;;  %v32_v30 = vld [vmem:[%s1236_s2 + $0x48] sm:$0xff]  ;;  %v47_v32 = vld [vmem:[%s1235_s3 + $0x40] sm:$0xff] }
   0xa   :  { %755 = vset.pattern.permute.xlu1 %v804_v8  ;;  %392 = vperm.xlu0 %762, %v867_v6   ;;  %v984_v31 = vld [vmem:[%s1236_s2 + $0x68] sm:$0xff]  ;;  %v50_v44 = vld [vmem:[%s1235_s3 + $0x58] sm:$0xff]  ;;  %v1045_v52 = vld [vmem:[%s1236_s2 + $0x60] sm:$0xff] }
   0xb   :  { %256 = vperm.xlu1 %755, %v872_v7   ;;  %v51_v59 = vld [vmem:[%s1235_s3 + $0x60] sm:$0xff] }
   0xe   :  { %783 = vset.pattern.permute.xlu0 %v803_v1 }
   0xf   :  { %756 = vset.pattern.permute.xlu1 %v803_v1  ;;  %57 = vperm.xlu0 %783, %v23_v9  }
  0x10   :  { %67 = vperm.xlu1 %756, %v852_v3  }
  0x13   :  { %62 = vperm.xlu0 %783, %v872_v7  }
  0x14   :  { %757 = vset.pattern.permute.xlu1 %v802_v0 }
  0x15   :  { %352 = vperm.xlu1 %757, %v23_v9  }
  0x17   :  { %72 = vperm.xlu0 %783, %v26_v10  }
  0x19   :  { %356 = vperm.xlu1 %757, %v872_v7  }
  0x1b   :  { %167 = vperm.xlu0 %783, %v41_v11  }
  0x1d   :  { %758 = vset.pattern.permute.xlu1 %v803_v1 }
  0x1e   :  { %172 = vperm.xlu1 %758, %v42_v12  }
  0x1f   :  { %182 = vperm.xlu0 %783, %v44_v13  }
  0x22   :  { %759 = vset.pattern.permute.xlu1 %v804_v8 }
  0x23   :  { %92 = vperm.xlu0 %783, %v902_v14   ;;  %264 = vperm.xlu1 %759, %v26_v10  }
  0x27   :  { %187 = vperm.xlu0 %783, %v45_v15   ;;  %760 = vset.pattern.permute.xlu1 %v805_v16 }
  0x28   :  { %452 = vperm.xlu1 %760, %v23_v9  }
  0x2b   :  { %202 = vperm.xlu0 %783, %v48_v17  }
  0x2c   :  { %761 = vset.pattern.permute.xlu1 %v803_v1 }
  0x2d   :  { %77 = vperm.xlu1 %761, %v27_v18  }
  0x2f   :  { %112 = vperm.xlu0 %783, %v920_v19  }
  0x31   :  { %82 = vperm.xlu1 %761, %v28_v20  }
  0x33   :  { %207 = vperm.xlu0 %783, %v49_v21  }
  0x35   :  { %763 = vset.pattern.permute.xlu1 %v802_v0 }
  0x36   :  { %364 = vperm.xlu1 %763, %v26_v10  }
  0x37   :  { %222 = vperm.xlu0 %783, %v52_v22  }
  0x3a   :  { %764 = vset.pattern.permute.xlu1 %v803_v1 }
  0x3b   :  { %132 = vperm.xlu0 %783, %v936_v23   ;;  %177 = vperm.xlu1 %764, %v43_v24  }
  0x3f   :  { %227 = vperm.xlu0 %783, %v53_v25   ;;  %765 = vset.pattern.permute.xlu1 %v804_v8 }
  0x40   :  { %268 = vperm.xlu1 %765, %v27_v18  }
  0x43   :  { %790 = vset.pattern.permute.xlu0 %v804_v8 }
  0x44   :  { %252 = vperm.xlu0 %790, %v23_v9   ;;  %272 = vperm.xlu1 %765, %v28_v20  }
  0x48   :  { %260 = vperm.xlu0 %790, %v852_v3   ;;  %766 = vset.pattern.permute.xlu1 %v805_v16 }
  0x49   :  { %464 = vperm.xlu1 %766, %v26_v10   ;;  %v22_v10 = vld [vmem:[%s1238_s1] sm:$0xf] }
  0x4c   :  { %276 = vperm.xlu0 %790, %v861_v5  }
  0x4d   :  { %767 = vset.pattern.permute.xlu1 %v803_v1 }
  0x4e   :  { %87 = vperm.xlu1 %767, %v861_v5  }
  0x50   :  { %292 = vperm.xlu0 %790, %v867_v6  }
  0x52   :  { %768 = vset.pattern.permute.xlu1 %v802_v0 }
  0x53   :  { %368 = vperm.xlu1 %768, %v27_v18  }
  0x54   :  { %308 = vperm.xlu0 %790, %v957_v26  }
  0x57   :  { %372 = vperm.xlu1 %768, %v28_v20  }
  0x58   :  { %792 = vset.pattern.permute.xlu0 %v805_v16 }
  0x59   :  { %456 = vperm.xlu0 %792, %v872_v7  }
  0x5b   :  { %769 = vset.pattern.permute.xlu1 %v803_v1 }
  0x5c   :  { %192 = vperm.xlu1 %769, %v46_v27  }
  0x5d   :  { %460 = vperm.xlu0 %792, %v852_v3  }
  0x60   :  { %770 = vset.pattern.permute.xlu1 %v804_v8 }
  0x61   :  { %472 = vperm.xlu0 %792, %v28_v20   ;;  %280 = vperm.xlu1 %770, %v902_v14  }
  0x65   :  { %476 = vperm.xlu0 %792, %v861_v5   ;;  %771 = vset.pattern.permute.xlu1 %v805_v16  ;;  %v136_v5 = vshrl.u32 %v135_v2, 7 }
  0x66   :  { %468 = vperm.xlu1 %771, %v27_v18  }
  0x67   :  { %v317_v11 = vsub.s32 1, %v136_v5  ;;  %v417_v15 = vsub.s32 2, %v136_v5 }
  0x69   :  { %488 = vperm.xlu0 %792, %v32_v30   ;;  %v1092_v17 = vrot.slane %v22_v10, %v317_v11  ;;  %v1097_v22 = vrot.slane %v22_v10, %v417_v15 }
  0x6a   :  { %772 = vset.pattern.permute.xlu1 %v803_v1 }
  0x6b   :  { %97 = vperm.xlu1 %772, %v31_v29  }
  0x6d   :  { %492 = vperm.xlu0 %792, %v867_v6  }
  0x6f   :  { %102 = vperm.xlu1 %772, %v32_v30  }
  0x71   :  { %504 = vperm.xlu0 %792, %v984_v31  }
  0x73   :  { %773 = vset.pattern.permute.xlu1 %v802_v0 }
  0x74   :  { %380 = vperm.xlu1 %773, %v902_v14  }
  0x75   :  { %508 = vperm.xlu0 %792, %v957_v26  }
  0x78   :  { %774 = vset.pattern.permute.xlu1 %v803_v1 }
  0x79   :  { %197 = vperm.xlu1 %774, %v47_v32   ;;  %797 = vset.pattern.permute.xlu0 %v803_v1 }
  0x7d   :  { %775 = vset.pattern.permute.xlu1 %v804_v8 }
  0x7e   :  { %284 = vperm.xlu1 %775, %v31_v29  }
  0x81   :  { %v996_v33 = vpop.permute.xlu1 %157  ;;  %v998_v34 = vpop.permute.xlu0 %360 }
  0x82   :  { %288 = vperm.xlu1 %775, %v32_v30  }
  0x85   :  { %v1000_v35 = vpop.permute.xlu1 %162  ;;  %v1002_v36 = vpop.permute.xlu0 %376 }
  0x86   :  { %776 = vset.pattern.permute.xlu1 %v805_v16 }
  0x87   :  { %480 = vperm.xlu1 %776, %v902_v14  }
  0x89   :  { %v1006_v37 = vpop.permute.xlu0 %392 }
  0x8a   :  { %v1008_v38 = vpop.permute.xlu1 %256 }
  0x8b   :  { %777 = vset.pattern.permute.xlu1 %v803_v1 }
  0x8c   :  { %107 = vperm.xlu1 %777, %v867_v6   ;;  %v137_v6 = vsub.s32 0, %v136_v5 }
  0x8e   :  { %v1012_v39 = vpop.permute.xlu0 %57  ;;  %v1088_v12 = vrot.slane %v22_v10, %v137_v6 }
  0x8f   :  { %v1014_v40 = vpop.permute.xlu1 %67 }
  0x90   :  { %778 = vset.pattern.permute.xlu1 %v802_v0  ;;  %v139_v18 = vmul.f32 %v1088_v12, %v1012_v39  ;;  %v425_v39 = vmul.f32 %v1097_v22, %v1002_v36  ;;  %v320_v36 = vmul.f32 %v1092_v17, %v1008_v38 }
  0x91   :  { %384 = vperm.xlu1 %778, %v31_v29  }
  0x92   :  { %v1017_v41 = vpop.permute.xlu0 %62  ;;  %v235_v27 = vadd.f32 %v996_v33, %v139_v18 }
  0x94   :  { %v1019_v42 = vpop.permute.xlu1 %352 }
  0x95   :  { %388 = vperm.xlu1 %778, %v32_v30   ;;  %v517_v30 = vsub.s32 3, %v136_v5 }
  0x96   :  { %v1021_v43 = vpop.permute.xlu0 %72 }
  0x97   :  { %v142_v2 = vmul.f32 %v1088_v12, %v1021_v43  ;;  %v1115_v5 = vrot.slane %v22_v10, %v517_v30 }
  0x98   :  { %v1026_v45 = vpop.permute.xlu1 %356 }
  0x99   :  { %779 = vset.pattern.permute.xlu1 %v803_v1 }
  0x9a   :  { %v1029_v46 = vpop.permute.xlu0 %167  ;;  %212 = vperm.xlu1 %779, %v50_v44  }
  0x9d   :  { %v1031_v47 = vpop.permute.xlu1 %172 }
  0x9e   :  { %780 = vset.pattern.permute.xlu1 %v804_v8  ;;  %v1034_v48 = vpop.permute.xlu0 %182  ;;  %v238_v38 = vadd.f32 %v1031_v47, %v142_v2 }
  0x9f   :  { %296 = vperm.xlu1 %780, %v920_v19  }
  0xa2   :  { %v1037_v49 = vpop.permute.xlu1 %264  ;;  %v1039_v50 = vpop.permute.xlu0 %92 }
  0xa3   :  { %781 = vset.pattern.permute.xlu1 %v805_v16 }
  0xa4   :  { %484 = vperm.xlu1 %781, %v31_v29   ;;  %v140_v29 = vmul.f32 %v1088_v12, %v1017_v41  ;;  %v419_v41 = vmul.f32 %v1097_v22, %v1019_v42  ;;  %v420_v42 = vmul.f32 %v1097_v22, %v1026_v45  ;;  %v421_v45 = vmul.f32 %v1097_v22, %v998_v34 }
  0xa6   :  { %v188_v51 = vpop.permute.xlu0 %187  ;;  %v236_v33 = vadd.f32 %v1000_v35, %v140_v29  ;;  %v141_v35 = vmul.f32 %v1088_v12, %v1014_v40 }
  0xa7   :  { %v1047_v53 = vpop.permute.xlu1 %452 }
  0xa8   :  { %782 = vset.pattern.permute.xlu1 %v803_v1  ;;  %v519_v40 = vmul.f32 %v1115_v5, %v1047_v53 }
  0xa9   :  { %117 = vperm.xlu1 %782, %v1045_v52  }
  0xaa   :  { %v1051_v54 = vpop.permute.xlu0 %202 }
  0xac   :  { %v1053_v55 = vpop.permute.xlu1 %77 }
  0xad   :  { %122 = vperm.xlu1 %782, %v984_v31  }
  0xae   :  { %v1056_v56 = vpop.permute.xlu0 %112 }
  0xb0   :  { %v1058_v57 = vpop.permute.xlu1 %82 }
  0xb1   :  { %784 = vset.pattern.permute.xlu1 %v802_v0 }
  0xb2   :  { %396 = vperm.xlu1 %784, %v920_v19   ;;  %v1062_v58 = vpop.permute.xlu0 %207 }
  0xb5   :  { %v365_v60 = vpop.permute.xlu1 %364 }
  0xb6   :  { %785 = vset.pattern.permute.xlu1 %v803_v1  ;;  %v1068_v61 = vpop.permute.xlu0 %222  ;;  %v422_v18 = vmul.f32 %v1097_v22, %v365_v60 }
  0xb7   :  { %217 = vperm.xlu1 %785, %v51_v59  }
  0xba   :  { %v1070_v62 = vpop.permute.xlu1 %177  ;;  %v1072_v63 = vpop.permute.xlu0 %132 }
  0xbb   :  { %786 = vset.pattern.permute.xlu1 %v804_v8 }
  0xbc   :  { %300 = vperm.xlu1 %786, %v1045_v52  }
  0xbe   :  { %v1076_v3 = vpop.permute.xlu0 %227 }
  0xbf   :  { %v1078_v4 = vpop.permute.xlu1 %268 }
  0xc0   :  { %304 = vperm.xlu1 %786, %v984_v31  }
  0xc3   :  { %v253_v7 = vpop.permute.xlu0 %252  ;;  %v1081_v9 = vpop.permute.xlu1 %272 }
  0xc4   :  { %787 = vset.pattern.permute.xlu1 %v805_v16  ;;  %v319_v20 = vmul.f32 %v1092_v17, %v253_v7  ;;  %v324_v2 = vmul.f32 %v1092_v17, %v1081_v9 }
  0xc5   :  { %496 = vperm.xlu1 %787, %v920_v19  }
  0xc6   :  { %v335_v59 = vadd.f32 %v319_v20, %v235_v27  ;;  %v237_v20 = vadd.f32 %v1029_v46, %v141_v35 }
  0xc7   :  { %v261_v13 = vpop.permute.xlu0 %260 }
  0xc8   :  { %v465_v14 = vpop.permute.xlu1 %464  ;;  %v435_v10 = vadd.f32 %v419_v41, %v335_v59  ;;  %v321_v15 = vmul.f32 %v1092_v17, %v261_v13 }
  0xc9   :  { %788 = vset.pattern.permute.xlu1 %v803_v1 }
  0xca   :  { %127 = vperm.xlu1 %788, %v957_v26   ;;  %v535_v27 = vadd.f32 %v519_v40, %v435_v10 }
  0xcb   :  { %v277_v19 = vpop.permute.xlu0 %276 }
  0xcc   :  { %v325_v24 = vmul.f32 %v1092_v17, %v277_v19  ;;  %v336_v19 = vadd.f32 %v320_v36, %v236_v33  ;;  %v551_v59 = vmax.f32 %v535_v27, 0.0 }
  0xcd   :  { %v88_v21 = vpop.permute.xlu1 %87 }
  0xce   :  { %v145_v25 = vmul.f32 %v1088_v12, %v88_v21  ;;  %789 = vset.pattern.permute.xlu1 %v802_v0  ;;  %v522_v21 = vmul.f32 %v1115_v5, %v465_v14  ;;  %v436_v47 = vadd.f32 %v420_v42, %v336_v19 }
  0xcf   :  { %400 = vperm.xlu1 %789, %v1045_v52   ;;  %v1106_v32 = vpop.permute.xlu0 %292 }
  0xd0   :  { %v241_v44 = vadd.f32 %v188_v51, %v145_v25  ;;  %v322_v51 = vmul.f32 %v1092_v17, %v1037_v49  ;;  %v337_v25 = vadd.f32 %v321_v15, %v237_v20 }
  0xd2   :  { %v341_v6 = vadd.f32 %v325_v24, %v241_v44  ;;  %v369_v7 = vpop.permute.xlu1 %368  ;;  %v338_v13 = vadd.f32 %v322_v51, %v238_v38  ;;  %v437_v14 = vadd.f32 %v421_v45, %v337_v25  ;;  %v146_v25 = vmul.f32 %v1088_v12, %v1039_v50 }
  0xd3   :  { %404 = vperm.xlu1 %789, %v984_v31   ;;  %v1118_v11 = vpop.permute.xlu0 %308  ;;  %v54_v31 = vld [vmem:[%s1235_s3 + $0x78] sm:$0xff] }
  0xd4   :  { %v1124_v43 = vadd.f32 %v425_v39, %v341_v6  ;;  %v438_v29 = vadd.f32 %v422_v18, %v338_v13  ;;  %v143_v6 = vmul.f32 %v1088_v12, %v1053_v55  ;;  %v423_v55 = vmul.f32 %v1097_v22, %v369_v7 }
  0xd6   :  { %v373_v49 = vpop.permute.xlu1 %372  ;;  %v538_v53 = vadd.f32 %v522_v21, %v438_v29  ;;  %v239_v42 = vadd.f32 %v1070_v62, %v143_v6  ;;  %v329_v6 = vmul.f32 %v1092_v17, %v1106_v32 }
  0xd7   :  { %791 = vset.pattern.permute.xlu1 %v803_v1  ;;  %v144_v1 = vmul.f32 %v1088_v12, %v1058_v57  ;;  %v424_v36 = vmul.f32 %v1097_v22, %v373_v49 }
  0xd8   :  { %v457_v24 = vpop.permute.xlu0 %456  ;;  %232 = vperm.xlu1 %791, %v54_v31   ;;  %v554_v10 = vmax.f32 %v538_v53, 0.0 }
  0xd9   :  { %v520_v60 = vmul.f32 %v1115_v5, %v457_v24  ;;  %v240_v57 = vadd.f32 %v1034_v48, %v144_v1  ;;  %v808_v24 = vmov 0.0  }
  0xda   :  { %720 = vmatprep.mubr.msk.f32.mxu0 %vm807_vm0, %v808_v24 }
  0xdb   :  { %v536_v46 = vadd.f32 %v520_v60, %v436_v47  ;;  %v1144_v30 = vpop.permute.xlu1 %192  ;;  %v340_v9 = vadd.f32 %v324_v2, %v240_v57  ;;  %v429_v57 = vmul.f32 %v1097_v22, %v1006_v37 }
  0xdc   :  { %v461_v39 = vpop.permute.xlu0 %460  ;;  %793 = vset.pattern.permute.xlu1 %v804_v8  ;;  %v323_v8 = vmul.f32 %v1092_v17, %v1078_v4 }
  0xdd   :  { %v552_v34 = vmax.f32 %v536_v46, 0.0  ;;  %v521_v44 = vmul.f32 %v1115_v5, %v461_v39  ;;  %312 = vperm.xlu1 %793, %v936_v23   ;;  %v440_v38 = vadd.f32 %v424_v36, %v340_v9 }
  0xde   :  { %v339_v4 = vadd.f32 %v323_v8, %v239_v42 }
  0xdf   :  { %v537_v33 = vadd.f32 %v521_v44, %v437_v14  ;;  %v724_v41 = vpack.c.bf16 %v552_v34, %v551_v59 }
  0xe0   :  { %v473_v51 = vpop.permute.xlu0 %472  ;;  %v281_v35 = vpop.permute.xlu1 %280  ;;  %v439_v62 = vadd.f32 %v423_v55, %v339_v4 }
  0xe1   :  { %v553_v15 = vmax.f32 %v537_v33, 0.0  ;;  %794 = vset.pattern.permute.xlu1 %v805_v16  ;;  %725 = vmatpush3.bf16.msra.mxu0 %v724_v41  ;;  %v524_v31 = vmul.f32 %v1115_v5, %v473_v51 }
  0xe2   :  { %500 = vperm.xlu1 %794, %v1045_v52   ;;  %726 = vmatprep.subr.bf16.mxu0 %v806_v28 }
  0xe3   :  { %v727_v48 = vpack.c.bf16 %v554_v10, %v553_v15  ;;  %v540_v49 = vadd.f32 %v524_v31, %v440_v38 }
  0xe4   :  { %v477_v60 = vpop.permute.xlu0 %476 }
  0xe5   :  { %v469_v18 = vpop.permute.xlu1 %468  ;;  %728 = vmatpush3.bf16.msra.mxu0 %v727_v48  ;;  %v556_v20 = vmax.f32 %v540_v49, 0.0  ;;  %v525_v29 = vmul.f32 %v1115_v5, %v477_v60 }
  0xe6   :  { %v523_v19 = vmul.f32 %v1115_v5, %v469_v18  ;;  %795 = vset.pattern.permute.xlu1 %v802_v0  ;;  %729 = vmatprep.subr.bf16.mxu0 %v806_v28 }
  0xe7   :  { %408 = vperm.xlu1 %795, %v957_v26   ;;  %v568_v26 = vld [vmem:[%s1239_s5] sm:$0x3]  ;;  %v541_v39 = vadd.f32 %v525_v29, %v1124_v43 }
  0xe8   :  { %v539_v7 = vadd.f32 %v523_v19, %v439_v62  ;;  %571 = vperm.xlu0 %797, %v568_v26   ;;  %v489_v31 = vpop.permute.xlu0 %488 }
  0xe9   :  { %v557_v59 = vmax.f32 %v541_v39, 0.0  ;;  %v528_v4 = vmul.f32 %v1115_v5, %v489_v31 }
  0xea   :  { %v555_v52 = vmax.f32 %v539_v7, 0.0  ;;  %v98_v40 = vpop.permute.xlu1 %97 }
  0xeb   :  { %412 = vperm.xlu1 %795, %v936_v23  }
  0xec   :  { %v730_v45 = vpack.c.bf16 %v556_v20, %v555_v52 }
  0xee   :  { %v103_v13 = vpop.permute.xlu1 %102  ;;  %731 = vmatpush3.bf16.msra.mxu0 %v730_v45 }
  0xef   :  { %796 = vset.pattern.permute.xlu1 %v805_v16  ;;  %732 = vmatprep.subr.bf16.mxu0 %v806_v28  ;;  %v326_v16 = vmul.f32 %v1092_v17, %v281_v35  ;;  %v148_v35 = vmul.f32 %v1088_v12, %v103_v13 }
  0xf0   :  { %512 = vperm.xlu1 %796, %v936_v23   ;;  %v242_v23 = vadd.f32 %v1144_v30, %v146_v25  ;;  %v150_v25 = vmul.f32 %v1088_v12, %v1056_v56 }
  0xf1   :  { %v244_v10 = vadd.f32 %v1051_v54, %v148_v35 }
  0xf2   :  { %v342_v1 = vadd.f32 %v326_v16, %v242_v23 }
  0xf3   :  { %v381_v0 = vpop.permute.xlu1 %380 }
  0xf4   :  { %v426_v46 = vmul.f32 %v1097_v22, %v381_v0 }
  0xf6   :  { %v442_v34 = vadd.f32 %v426_v46, %v342_v1 }
  0xf8   :  { %v198_v21 = vpop.permute.xlu1 %197 }
  0xfd   :  { %v285_v47 = vpop.permute.xlu1 %284 }
  0xfe   :  { %v327_v9 = vmul.f32 %v1092_v17, %v285_v47  ;;  %v493_v47 = vpop.permute.xlu0 %492 }
 0x101   :  { %v289_v27 = vpop.permute.xlu1 %288 }
 0x102   :  { %v328_v32 = vmul.f32 %v1092_v17, %v289_v27  ;;  %v529_v27 = vmul.f32 %v1115_v5, %v493_v47 }
 0x104   :  { %v344_v37 = vadd.f32 %v328_v32, %v244_v10 }
 0x106   :  { %v481_v53 = vpop.permute.xlu1 %480 }
 0x107   :  { %v526_v14 = vmul.f32 %v1115_v5, %v481_v53 }
 0x109   :  { %v542_v44 = vadd.f32 %v526_v14, %v442_v34 }
 0x10b   :  { %v558_v50 = vmax.f32 %v542_v44, 0.0  ;;  %v108_v2 = vpop.permute.xlu1 %107 }
 0x10c   :  { %v149_v30 = vmul.f32 %v1088_v12, %v108_v2 }
 0x10d   :  { %v733_v33 = vpack.c.bf16 %v558_v50, %v557_v59 }
 0x10e   :  { %v245_v41 = vadd.f32 %v1062_v58, %v149_v30  ;;  %v147_v58 = vmul.f32 %v1088_v12, %v98_v40 }
 0x10f   :  { %734 = vmatpush3.bf16.msra.mxu0 %v733_v33 }
 0x110   :  { %v345_v43 = vadd.f32 %v329_v6, %v245_v41  ;;  %v385_v8 = vpop.permute.xlu1 %384  ;;  %735 = vmatprep.subr.bf16.mxu0 %v806_v28  ;;  %v243_v48 = vadd.f32 %v198_v21, %v147_v58 }
 0x111   :  { %v427_v38 = vmul.f32 %v1097_v22, %v385_v8 }
 0x112   :  { %v445_v36 = vadd.f32 %v429_v57, %v345_v43  ;;  %v343_v62 = vadd.f32 %v327_v9, %v243_v48 }
 0x114   :  { %v389_v51 = vpop.permute.xlu1 %388  ;;  %v443_v19 = vadd.f32 %v427_v38, %v343_v62  ;;  %v545_v53 = vadd.f32 %v529_v27, %v445_v36 }
 0x115   :  { %v428_v15 = vmul.f32 %v1097_v22, %v389_v51 }
 0x116   :  { %v561_v44 = vmax.f32 %v545_v53, 0.0 }
 0x117   :  { %v444_v18 = vadd.f32 %v428_v15, %v344_v37 }
 0x119   :  { %v213_v42 = vpop.permute.xlu1 %212  ;;  %v544_v7 = vadd.f32 %v528_v4, %v444_v18 }
 0x11a   :  { %v246_v23 = vadd.f32 %v213_v42, %v150_v25  ;;  %v505_v42 = vpop.permute.xlu0 %504 }
 0x11b   :  { %v560_v52 = vmax.f32 %v544_v7, 0.0  ;;  %v532_v15 = vmul.f32 %v1115_v5, %v505_v42 }
 0x11e   :  { %v297_v55 = vpop.permute.xlu1 %296 }
 0x11f   :  { %v330_v60 = vmul.f32 %v1092_v17, %v297_v55 }
 0x121   :  { %v346_v46 = vadd.f32 %v330_v60, %v246_v23 }
 0x123   :  { %v485_v49 = vpop.permute.xlu1 %484 }
 0x124   :  { %v527_v54 = vmul.f32 %v1115_v5, %v485_v49 }
 0x126   :  { %v543_v20 = vadd.f32 %v527_v54, %v443_v19  ;;  %v333_v19 = vmul.f32 %v1092_v17, %v1118_v11 }
 0x128   :  { %v559_v40 = vmax.f32 %v543_v20, 0.0  ;;  %v118_v45 = vpop.permute.xlu1 %117  ;;  %v154_v20 = vmul.f32 %v1088_v12, %v1072_v63 }
 0x129   :  { %v151_v8 = vmul.f32 %v1088_v12, %v118_v45 }
 0x12a   :  { %v736_v13 = vpack.c.bf16 %v560_v52, %v559_v40 }
 0x12c   :  { %v123_v0 = vpop.permute.xlu1 %122  ;;  %737 = vmatpush3.bf16.msra.mxu0 %v736_v13  ;;  %v509_v13 = vpop.permute.xlu0 %508 }
 0x12d   :  { %738 = vmatprep.subr.bf16.mxu0 %v806_v28  ;;  %v152_v30 = vmul.f32 %v1088_v12, %v123_v0  ;;  %v533_v11 = vmul.f32 %v1115_v5, %v509_v13 }
 0x12f   :  { %v248_v57 = vadd.f32 %v1068_v61, %v152_v30 }
 0x131   :  { %v397_v21 = vpop.permute.xlu1 %396 }
 0x132   :  { %v430_v29 = vmul.f32 %v1097_v22, %v397_v21 }
 0x134   :  { %v446_v39 = vadd.f32 %v430_v29, %v346_v46 }
 0x136   :  { %v218_v24 = vpop.permute.xlu1 %217 }
 0x137   :  { %v247_v32 = vadd.f32 %v218_v24, %v151_v8 }
 0x13b   :  { %v301_v26 = vpop.permute.xlu1 %300 }
 0x13c   :  { %v331_v36 = vmul.f32 %v1092_v17, %v301_v26 }
 0x13e   :  { %v347_v9 = vadd.f32 %v331_v36, %v247_v32 }
 0x13f   :  { %v305_v16 = vpop.permute.xlu1 %304 }
 0x140   :  { %v332_v41 = vmul.f32 %v1092_v17, %v305_v16 }
 0x142   :  { %v348_v51 = vadd.f32 %v332_v41, %v248_v57 }
 0x144   :  { %v497_v1 = vpop.permute.xlu1 %496 }
 0x145   :  { %v530_v34 = vmul.f32 %v1115_v5, %v497_v1 }
 0x147   :  { %v546_v14 = vadd.f32 %v530_v34, %v446_v39 }
 0x149   :  { %v562_v59 = vmax.f32 %v546_v14, 0.0  ;;  %v128_v50 = vpop.permute.xlu1 %127 }
 0x14a   :  { %v153_v55 = vmul.f32 %v1088_v12, %v128_v50 }
 0x14b   :  { %v739_v2 = vpack.c.bf16 %v562_v59, %v561_v44 }
 0x14c   :  { %v249_v38 = vadd.f32 %v1076_v3, %v153_v55 }
 0x14d   :  { %740 = vmatpush3.bf16.msra.mxu0 %v739_v2 }
 0x14e   :  { %v401_v56 = vpop.permute.xlu1 %400  ;;  %741 = vmatprep.subr.bf16.mxu0 %v806_v28  ;;  %v349_v40 = vadd.f32 %v333_v19, %v249_v38 }
 0x14f   :  { %v431_v10 = vmul.f32 %v1097_v22, %v401_v56 }
 0x151   :  { %v447_v61 = vadd.f32 %v431_v10, %v347_v9 }
 0x152   :  { %v405_v6 = vpop.permute.xlu1 %404 }
 0x153   :  { %v432_v43 = vmul.f32 %v1097_v22, %v405_v6 }
 0x155   :  { %v448_v58 = vadd.f32 %v432_v43, %v348_v51 }
 0x157   :  { %v233_v33 = vpop.permute.xlu1 %232  ;;  %v548_v31 = vadd.f32 %v532_v15, %v448_v58 }
 0x158   :  { %v250_v3 = vadd.f32 %v233_v33, %v154_v20 }
 0x159   :  { %v564_v18 = vmax.f32 %v548_v31, 0.0 }
 0x15c   :  { %v313_v35 = vpop.permute.xlu1 %312 }
 0x15d   :  { %v334_v52 = vmul.f32 %v1092_v17, %v313_v35 }
 0x15f   :  { %v350_v24 = vadd.f32 %v334_v52, %v250_v3 }
 0x161   :  { %v501_v37 = vpop.permute.xlu1 %500 }
 0x162   :  { %v531_v48 = vmul.f32 %v1115_v5, %v501_v37 }
 0x164   :  { %v547_v4 = vadd.f32 %v531_v48, %v447_v61 }
 0x166   :  { %v563_v62 = vmax.f32 %v547_v4, 0.0  ;;  %v409_v49 = vpop.permute.xlu1 %408 }
 0x167   :  { %v433_v7 = vmul.f32 %v1097_v22, %v409_v49  ;;  %v572_v27 = vpop.permute.xlu0 %571 }
 0x168   :  { %v742_v54 = vpack.c.bf16 %v564_v18, %v563_v62 }
 0x169   :  { %v449_v0 = vadd.f32 %v433_v7, %v349_v40 }
 0x16a   :  { %v413_v45 = vpop.permute.xlu1 %412  ;;  %743 = vmatpush3.bf16.msra.mxu0 %v742_v54 }
 0x16b   :  { %744 = vmatprep.subr.bf16.mxu0 %v806_v28  ;;  %v434_v21 = vmul.f32 %v1097_v22, %v413_v45  ;;  %v549_v47 = vadd.f32 %v533_v11, %v449_v0  ;;  %v567_v28 = vld [vmem:[%s1240_s4] sm:$0x3] }
 0x16d   :  { %v450_v25 = vadd.f32 %v434_v21, %v350_v24  ;;  %v565_v17 = vmax.f32 %v549_v47, 0.0 }
 0x16f   :  { %v513_v26 = vpop.permute.xlu1 %512 }
 0x170   :  { %v534_v63 = vmul.f32 %v1115_v5, %v513_v26 }
 0x172   :  { %v550_v12 = vadd.f32 %v534_v63, %v450_v25 }
 0x174   :  { %v566_v60 = vmax.f32 %v550_v12, 0.0 }
 0x176   :  { %v745_v16 = vpack.c.bf16 %v566_v60, %v565_v17 }
 0x178   :  { %746 = vmatpush3.bf16.msra.mxu0 %v745_v16 }
 0x17b   :  { %721 = vmatmul.mubr.f32.vlgmr.msra.gmra.mrb[0].mxu0 %v567_v28 }
 0x24e   :  { %v640_v22 = vpop.f32.mrb[0].mxu0 }
 0x24f   :  { %v641_v23 = vadd.f32 %v640_v22, %v572_v27  ;;  %v722_v29 = vpop.f32.mrb[1].mxu0 }
 0x251   :  { %v645_v46 = vrot.slane %v641_v23, 7 }
 0x253   :  { %v647_v1 = vsub.f32 %v641_v23, %v645_v46 }
 0x255   :  { %v648_v53 = vand.u32 2147483647, %v647_v1  ;;  %vm658_vm1 = vcmp.gt.f32.partialorder %v647_v1, 0.0 }
 0x257   :  { %v649_v39 = vsub.f32 0.0, %v648_v53 }
 0x259   :  { %v650_v34 = vmul.f32 1.442695, %v649_v39 }
 0x25b   :  { %798 = vpow2.f32 %v650_v34 }
 0x265   :  { %v799_v5 = vpop.eup %798 }
 0x266   :  { %v652_v14 = vadd.f32 1.0, %v799_v5 }
 0x268   :  { %800 = vrcp.f32 %v652_v14 }
 0x272   :  { %v801_v44 = vpop.eup %800 }
 0x273   :  { %v654_v59 = vmul.f32 %v801_v44, %v652_v14 }
 0x275   :  { %v655_v50 = vsub.f32 2.0, %v654_v59 }
 0x277   :  { %v656_v2 = vmul.f32 %v801_v44, %v655_v50 }
 0x279   :  { %v657_v56 = vmul.f32 %v799_v5, %v656_v2 }
 0x27b   :  { %v659_v6 = vsel %vm658_vm1, %v657_v56, %v656_v2 }
 0x27c   :  { %v660_v30 = vsub.f32 1.0, %v659_v6  ;;  %v662_v33 = vrot.slane %v659_v6, 1 }
 0x27e   :  { %v665_v41 = vsel %vm664_vm2, %v662_v33, %v660_v30 }
 0x27f   :  { %666 = vst [vmem:[%s1241_s6] sm:$0x3] %v665_v41 }

</bundles_post_ra>
